<compile_context>
chip_gen: v7x
topology: tpu7x:2x2x1
jax: 0.10.0
libtpu: 0.0.40
codegen_flags: <defaults>
</compile_context>

<pallas_src>
import numpy as np
import jax
import jax.numpy as jnp
from jax.experimental import pallas as pl
from jax.experimental.pallas import tpu as pltpu

BN_EPS = 1e-5
COMPUTE_DTYPE = jnp.bfloat16   # MXU operand / pad-scratch dtype (accumulation stays f32)
CHAIN_DTYPE = jnp.bfloat16     # inter-block activation dtype in HBM


# --------------------------------------------------------------------------------------
# One-time capability / hardware probes
# --------------------------------------------------------------------------------------
def _probe_single_buffered_blockspec():
    """True iff pl.BlockSpec(..., pipeline_mode=pl.Buffered(1)) lowers on this JAX/TPU."""
    try:
        def _k(x_ref, o_ref):
            o_ref[...] = x_ref[...] + 1.0

        y = pl.pallas_call(
            _k,
            out_shape=jax.ShapeDtypeStruct((8, 128), jnp.float32),
            grid=(1,),
            in_specs=[pl.BlockSpec((8, 128), lambda i: (0, 0),
                                   pipeline_mode=pl.Buffered(1))],
            out_specs=pl.BlockSpec((8, 128), lambda i: (0, 0)),
        )(jnp.zeros((8, 128), jnp.float32))
        jax.block_until_ready(y)
        return True
    except Exception:
        return False


_SINGLE_BUFFER_WEIGHTS = _probe_single_buffered_blockspec()


def _pick_vmem_limit_bytes():
    """Per-generation VMEM limit: ~3/4 of physical (48 MiB on v7x, 96 MiB on v5e/v6e)."""
    try:
        cap = getattr(pltpu.get_tpu_info(), "vmem_capacity_bytes", None)
        if cap:
            return int(min(96 * 2 ** 20, cap * 3 // 4))
    except Exception:
        pass
    return 48 * 2 ** 20   # safe on every generation


_VMEM_LIMIT_BYTES = _pick_vmem_limit_bytes()


def _const_weight_spec(block_shape, index_map):
    """BlockSpec for grid-invariant operands; single-buffered when supported."""
    if _SINGLE_BUFFER_WEIGHTS:
        return pl.BlockSpec(block_shape, index_map, pipeline_mode=pl.Buffered(1))
    return pl.BlockSpec(block_shape, index_map)


# --------------------------------------------------------------------------------------
# Fused [maxpool2x2 ->] (conv3x3 + BN + ReLU) x 2 kernel (NB batch elements per grid step)
# --------------------------------------------------------------------------------------
def _make_double_conv_kernel(NB, Hin, Win, H, W, Cin, Cmid, Cout, pool, compute_dtype):
    # Number of Cin/Cmid-wide lane groups per padded row.
    G1 = (2 * W + 2) if pool else (W + 2)   # conv1 input rows ("spread" layout when pooled)
    G2 = W + 2                              # conv2 input rows (dense layout)

    def _store_padded(pad_ref, interior, c):
        # interior: (NB, H, groups*c) value.  One dense, lane-aligned, full-buffer store:
        # the zero border columns / rows are concatenated in-register, so there is no
        # per-step full-buffer zeroing and no offset masked interior store.
        nb, h, _ = interior.shape
        zc = jnp.zeros((nb, h, c), compute_dtype)
        rows = jnp.concatenate([zc, interior.astype(compute_dtype), zc], axis=-1)
        zr = jnp.zeros((nb, 1, rows.shape[-1]), compute_dtype)
        pad_ref[...] = jnp.concatenate([zr, rows, zr], axis=1)

    def _conv3x3(pad_ref, t_ref, b_ref, k_dim, c_out):
        # pad_ref: (NB, H+2, k_dim) bf16 zero-padded, lane-dense rows
        # t_ref  : (3, k_dim, W*c_out) bf16 banded weights (BN scale folded in)
        # b_ref  : (1, W*c_out) f32 folded BN bias, tiled over W
        acc = jnp.zeros((NB * H, W * c_out), jnp.float32)
        for dy in range(3):                      # 3 MXU matmuls, no im2col, no relayout
            lhs = pad_ref[:, dy:dy + H, :].reshape(NB * H, k_dim)
            acc = acc + jnp.dot(lhs, t_ref[dy], preferred_element_type=jnp.float32)
        return jnp.maximum(acc + b_ref[...], 0.0)          # (NB*H, W*c_out) f32

    def kernel(x_ref, t1_ref, b1_ref, t2_ref, b2_ref, o_ref, pad1_ref, pad2_ref):
        x = x_ref[...]                                      # (NB, Hin, Win*Cin) lane-dense
        if pool:
            # Vertical 2:1 over adjacent rows (free major-dim split + max).
            v = jnp.max(x.reshape(NB, H, 2, Win * Cin), axis=2)      # (NB, H, 2*W*Cin)
            # Horizontal 2:1: max with the lane-rotated row.  Valid results land on the
            # even Cin-groups; the odd groups hold don't-care values that conv1's banded
            # weights multiply by exact zeros, so no lane compaction is needed.
            shifted = jnp.concatenate([v[..., Cin:], v[..., :Cin]], axis=-1)
            interior1 = jnp.maximum(v, shifted)             # "spread" layout, width 2*W*Cin
        else:
            interior1 = x                                   # dense layout, width W*Cin

        _store_padded(pad1_ref, interior1, Cin)
        y1 = _conv3x3(pad1_ref, t1_ref, b1_ref, G1 * Cin, Cmid)      # stays in VMEM
        _store_padded(pad2_ref, y1.reshape(NB, H, W * Cmid), Cmid)
        y2 = _conv3x3(pad2_ref, t2_ref, b2_ref, G2 * Cmid, Cout)
        # Lane-dense output store: (NB, H, W*Cout) -> unmasked vst.
        o_ref[...] = y2.reshape(NB, H, W * Cout).astype(o_ref.dtype)

    return kernel


# --------------------------------------------------------------------------------------
# Host-side parameter prep: eval-mode BN fold + banded ("Toeplitz") weight construction
# --------------------------------------------------------------------------------------
def _fold_bn(gamma, beta, mean, var):
    scale = gamma / jnp.sqrt(var + BN_EPS)
    return scale, beta - mean * scale


def _prep_conv_banded(w_hwio, gamma, beta, mean, var, W, col_groups, n_groups, compute_dtype):
    """Fold eval-mode BN into the 3x3 HWIO weights and expand into banded matrices.

    col_groups[jpad] gives the lane group (unit = Cin) where padded input column jpad
    (0 = left zero border, W+1 = right zero border) lives in the pad-scratch rows.
    Returns T (3, n_groups*Cin, W*Cout) bf16 and bias (1, W*Cout) f32.
    """
    scale, bias = _fold_bn(gamma, beta, mean, var)
    cin, cout = w_hwio.shape[2], w_hwio.shape[3]
    w_folded = w_hwio * scale[None, None, None, :]              # (3, 3, Cin, Cout) f32
    placement = np.zeros((3, n_groups, W), np.float32)          # P[dx, g, w] = [g == col_groups[w+dx]]
    for dx in range(3):
        for w_col in range(W):
            placement[dx, col_groups[w_col + dx], w_col] = 1.0
    t = jnp.einsum("yxio,xgw->ygiwo", w_folded, jnp.asarray(placement))
    t = t.reshape(3, n_groups * cin, W * cout).astype(compute_dtype)
    bias_row = jnp.tile(bias, W).reshape(1, W * cout).astype(jnp.float32)
    return t, bias_row


def _pick_batch_block(batch, hw, target=256):
    """Batch elements per grid step; keeps per-step conv work >= ~256 output pixels."""
    nb = min(batch, max(1, -(-target // hw)))
    while batch % nb:
        nb -= 1
    return nb


# --------------------------------------------------------------------------------------
# Wrapper: one fused pallas_call per block, chain stays lane-dense (N, H, W*C) in HBM
# --------------------------------------------------------------------------------------
def double_conv_block(x_chain, p, *, pool, compute_dtype=COMPUTE_DTYPE, chain_dtype=CHAIN_DTYPE):
    """Fused [MaxPool2d(2) ->] DoubleConv.  x_chain is lane-dense (N, Hin, Win*Cin)."""
    N, Hin, win_cin = x_chain.shape
    Cin = p["w1"].shape[2]
    Cmid = p["w1"].shape[3]
    Cout = p["w2"].shape[3]
    Win = win_cin // Cin
    assert Win * Cin == win_cin

    if pool:
        assert Hin % 2 == 0 and Win % 2 == 0, "MaxPool2d(2) requires even H, W"
        H, W = Hin // 2, Win // 2
        # Pooled conv1 input is left in "spread" layout: pooled column k at group 2k+1.
        col_groups1 = [0] + [2 * k - 1 for k in range(1, W + 1)] + [2 * W + 1]
        groups1 = 2 * W + 2
    else:
        H, W = Hin, Win
        col_groups1 = list(range(W + 2))
        groups1 = W + 2
    col_groups2 = list(range(W + 2))
    groups2 = W + 2

    t1, b1 = _prep_conv_banded(p["w1"], p["g1"], p["b1"], p["m1"], p["v1"],
                               W, col_groups1, groups1, compute_dtype)
    t2, b2 = _prep_conv_banded(p["w2"], p["g2"], p["b2"], p["m2"], p["v2"],
                               W, col_groups2, groups2, compute_dtype)

    NB = _pick_batch_block(N, H * W)
    grid = (N // NB,)
    k1, n1 = groups1 * Cin, W * Cmid
    k2, n2 = groups2 * Cmid, W * Cout

    kernel = _make_double_conv_kernel(NB, Hin, Win, H, W, Cin, Cmid, Cout, pool, compute_dtype)

    out = pl.pallas_call(
        kernel,
        out_shape=jax.ShapeDtypeStruct((N, H, W * Cout), chain_dtype),
        grid=grid,
        in_specs=[
            pl.BlockSpec((NB, Hin, Win * Cin), lambda n: (n, 0, 0)),
            _const_weight_spec((3, k1, n1), lambda n: (0, 0, 0)),
            _const_weight_spec((1, n1), lambda n: (0, 0)),
            _const_weight_spec((3, k2, n2), lambda n: (0, 0, 0)),
            _const_weight_spec((1, n2), lambda n: (0, 0)),
        ],
        out_specs=pl.BlockSpec((NB, H, W * Cout), lambda n: (n, 0, 0)),
        scratch_shapes=[
            pltpu.VMEM((NB, H + 2, groups1 * Cin), compute_dtype),   # padded conv1 input
            pltpu.VMEM((NB, H + 2, groups2 * Cmid), compute_dtype),  # padded conv2 input
        ],
        compiler_params=pltpu.CompilerParams(
            dimension_semantics=("parallel",),        # batch blocks across TCs (v7x/v4/v5p)
            vmem_limit_bytes=_VMEM_LIMIT_BYTES,
        ),
    )(x_chain, t1, b1, t2, b2)
    return out                                         # (N, H, W*Cout) chain_dtype


# --------------------------------------------------------------------------------------
# Parameter init (deterministic, synthetic, HWIO) and module forward
# --------------------------------------------------------------------------------------
def _init_double_conv(key, cin, cout, cmid=None):
    if cmid is None:
        cmid = cout
    ks = jax.random.split(key, 10)
    p = {}
    p["w1"] = 0.1 * jax.random.normal(ks[0], (3, 3, cin, cmid), jnp.float32)
    p["g1"] = 1.0 + 0.1 * jax.random.normal(ks[1], (cmid,), jnp.float32)
    p["b1"] = 0.1 * jax.random.normal(ks[2], (cmid,), jnp.float32)
    p["m1"] = 0.1 * jax.random.normal(ks[3], (cmid,), jnp.float32)
    p["v1"] = 0.5 + jnp.abs(jax.random.normal(ks[4], (cmid,), jnp.float32))
    p["w2"] = 0.1 * jax.random.normal(ks[5], (3, 3, cmid, cout), jnp.float32)
    p["g2"] = 1.0 + 0.1 * jax.random.normal(ks[6], (cout,), jnp.float32)
    p["b2"] = 0.1 * jax.random.normal(ks[7], (cout,), jnp.float32)
    p["m2"] = 0.1 * jax.random.normal(ks[8], (cout,), jnp.float32)
    p["v2"] = 0.5 + jnp.abs(jax.random.normal(ks[9], (cout,), jnp.float32))
    return p


def init_vanilla_unet_encoder(key, in_channels, num_blocks, base_channels,
                              channel_multiplier=2, bilinear=False):
    channel_list = [base_channels * channel_multiplier ** i for i in range(num_blocks)]
    factor = 2 if bilinear else 1
    params = {}
    keys = jax.random.split(key, num_blocks + 1)
    params["block_0"] = _init_double_conv(keys[0], in_channels, base_channels)
    for i in range(num_blocks):
        if i != num_blocks - 1:
            cin, cout = channel_list[i], channel_list[i + 1]
        else:
            cin = channel_list[i]
            cout = channel_list[i] * channel_multiplier // factor
        params[f"encoder_block_{i + 1}"] = _init_double_conv(keys[i + 1], cin, cout)
    return params


def vanilla_unet_encoder_forward(params, x_nchw):
    """Forward pass; NCHW input / NCHW features to match the PyTorch module."""
    N, C, H, W = x_nchw.shape
    x = jnp.transpose(x_nchw, (0, 2, 3, 1)).reshape(N, H, W * C)   # lane-dense chain layout
    enc_features = {}
    last = None
    h, w = H, W
    for name, p in params.items():
        pool = name != "block_0"
        if pool:
            h //= 2
            w //= 2
        x = double_conv_block(x, p, pool=pool)
        cout = p["w2"].shape[3]
        # TODO(synk): emit the NCHW feature as a second lane-dense kernel output instead of
        #             this per-block XLA transpose (extra HBM read+write of the activation).
        feat = jnp.transpose(x.reshape(N, h, w, cout), (0, 3, 1, 2)).astype(jnp.float32)
        enc_features[name] = feat
        last = feat
    return last, enc_features


# --------------------------------------------------------------------------------------
if __name__ == "__main__":
    key = jax.random.PRNGKey(0)
    k_param, k_x = jax.random.split(key)

    in_channels, num_blocks, base_channels = 4, 2, 8
    N, H, W = 2, 16, 16

    params = init_vanilla_unet_encoder(k_param, in_channels, num_blocks, base_channels)
    x = jax.random.normal(k_x, (N, in_channels, H, W), jnp.float32)

    out, feats = vanilla_unet_encoder_forward(params, x)
    out = jax.block_until_ready(out)
    feats = jax.tree_util.tree_map(jax.block_until_ready, feats)

    # sanity: expected shapes (NCHW) and finiteness
    assert feats["block_0"].shape == (N, base_channels, H, W)
    assert feats["encoder_block_1"].shape == (N, 16, H // 2, W // 2)
    assert feats["encoder_block_2"].shape == (N, 32, H // 4, W // 4)
    assert out.shape == (N, 32, H // 4, W // 4)
    assert bool(jnp.all(jnp.isfinite(out)))

    print("KERNEL_OK")
</pallas_src>

<mosaic_0001>
module attributes {stable_mosaic.version = 11 : i64} {
  func.func @_k(%arg0: i32, %arg1: memref<8x128xf32, #tpu.memory_space<vmem>>, %arg2: memref<8x128xf32, #tpu.memory_space<vmem>>) attributes {dimension_semantics = [#tpu.dimension_semantics<arbitrary>], iteration_bounds = array<i64: 1>, scalar_prefetch = 0 : i64, scratch_operands = 0 : i64, tpu.core_type = #tpu.core_type<tc>, window_params = [{pipeline_mode = #tpu.pipeline_mode<synchronous>, transform_indices = @transform_0, window_bounds = array<i64: 8, 128>}, {pipeline_mode = #tpu.pipeline_mode<synchronous>, transform_indices = @transform_1, window_bounds = array<i64: 8, 128>}]} {
    %c0 = arith.constant 0 : index
    %c0_0 = arith.constant 0 : index
    %0 = vector.load %arg1[%c0, %c0_0] : memref<8x128xf32, #tpu.memory_space<vmem>>, vector<8x128xf32>
    %cst = arith.constant 1.000000e+00 : f32
    %1 = vector.broadcast %cst : f32 to vector<8x128xf32>
    %2 = arith.addf %0, %1 : vector<8x128xf32>
    %c0_1 = arith.constant 0 : index
    %c0_2 = arith.constant 0 : index
    %3 = vector.load %arg2[%c0_1, %c0_2] : memref<8x128xf32, #tpu.memory_space<vmem>>, vector<8x128xf32>
    tpu.vector_store %arg2[%c0_1, %c0_2], %2 {strides = array<i32>} : memref<8x128xf32, #tpu.memory_space<vmem>>, vector<8x128xf32>,
    return
  }
  func.func @transform_0(%arg0: i32) -> (i32, i32) {
    %c0_i32 = arith.constant 0 : i32
    %c0_i32_0 = arith.constant 0 : i32
    %c0_i32_1 = arith.constant 0 : i32
    return %c0_i32, %c0_i32_0 : i32, i32
  }
  func.func @transform_1(%arg0: i32) -> (i32, i32) {
    %c0_i32 = arith.constant 0 : i32
    %c0_i32_0 = arith.constant 0 : i32
    %c0_i32_1 = arith.constant 0 : i32
    return %c0_i32, %c0_i32_0 : i32, i32
  }
}

module attributes {stable_mosaic.version = 11 : i64} {
  func.func @kernel(%arg0: i32, %arg1: memref<1x16x64xf32, #tpu.memory_space<vmem>>, %arg2: memref<3x72x128xbf16, #tpu.memory_space<vmem>>, %arg3: memref<1x128xf32, #tpu.memory_space<vmem>>, %arg4: memref<3x144x128xbf16, #tpu.memory_space<vmem>>, %arg5: memref<1x128xf32, #tpu.memory_space<vmem>>, %arg6: memref<1x16x128xbf16, #tpu.memory_space<vmem>>, %arg7: memref<1x18x72xbf16, #tpu.memory_space<vmem>>, %arg8: memref<1x18x144xbf16, #tpu.memory_space<vmem>>) attributes {dimension_semantics = [#tpu.dimension_semantics<parallel>], iteration_bounds = array<i64: 2>, scalar_prefetch = 0 : i64, scratch_operands = 2 : i64, tpu.core_type = #tpu.core_type<tc>, window_params = [{transform_indices = @transform_0, window_bounds = array<i64: 1, 16, 64>}, {pipeline_mode = #tpu.pipeline_mode<synchronous>, transform_indices = @transform_1, window_bounds = array<i64: 3, 72, 128>}, {pipeline_mode = #tpu.pipeline_mode<synchronous>, transform_indices = @transform_2, window_bounds = array<i64: 1, 128>}, {pipeline_mode = #tpu.pipeline_mode<synchronous>, transform_indices = @transform_3, window_bounds = array<i64: 3, 144, 128>}, {pipeline_mode = #tpu.pipeline_mode<synchronous>, transform_indices = @transform_4, window_bounds = array<i64: 1, 128>}, {transform_indices = @transform_5, window_bounds = array<i64: 1, 16, 128>}]} {
    %c0 = arith.constant 0 : index
    %c0_0 = arith.constant 0 : index
    %c0_1 = arith.constant 0 : index
    %0 = vector.load %arg1[%c0, %c0_0, %c0_1] : memref<1x16x64xf32, #tpu.memory_space<vmem>>, vector<1x16x64xf32>
    %cst = arith.constant 0.000000e+00 : bf16
    %1 = vector.broadcast %cst : bf16 to vector<1x16x4xbf16>
    %2 = arith.truncf %0 : vector<1x16x64xf32> to vector<1x16x64xbf16>
    %3 = tpu.concatenate %1, %2, %1 in 2 : vector<1x16x4xbf16>, vector<1x16x64xbf16>, vector<1x16x4xbf16> -> vector<1x16x72xbf16>
    %cst_2 = arith.constant 0.000000e+00 : bf16
    %4 = vector.broadcast %cst_2 : bf16 to vector<1x1x72xbf16>
    %5 = tpu.concatenate %4, %3, %4 in 1 : vector<1x1x72xbf16>, vector<1x16x72xbf16>, vector<1x1x72xbf16> -> vector<1x18x72xbf16>
    %c0_3 = arith.constant 0 : index
    %c0_4 = arith.constant 0 : index
    %c0_5 = arith.constant 0 : index
    %6 = vector.load %arg7[%c0_3, %c0_4, %c0_5] : memref<1x18x72xbf16, #tpu.memory_space<vmem>>, vector<1x18x72xbf16>
    tpu.vector_store %arg7[%c0_3, %c0_4, %c0_5], %5 {strides = array<i32>} : memref<1x18x72xbf16, #tpu.memory_space<vmem>>, vector<1x18x72xbf16>,
    %cst_6 = arith.constant 0.000000e+00 : f32
    %7 = vector.broadcast %cst_6 : f32 to vector<16x128xf32>
    %c0_7 = arith.constant 0 : index
    %c0_8 = arith.constant 0 : index
    %c0_9 = arith.constant 0 : index
    %8 = vector.load %arg7[%c0_7, %c0_8, %c0_9] : memref<1x18x72xbf16, #tpu.memory_space<vmem>>, vector<1x16x72xbf16>
    %9 = vector.shape_cast %8 : vector<1x16x72xbf16> to vector<16x72xbf16>
    %c0_10 = arith.constant 0 : index
    %c0_11 = arith.constant 0 : index
    %c0_12 = arith.constant 0 : index
    %10 = vector.load %arg2[%c0_10, %c0_11, %c0_12] : memref<3x72x128xbf16, #tpu.memory_space<vmem>>, vector<1x72x128xbf16>
    %11 = vector.shape_cast %10 : vector<1x72x128xbf16> to vector<72x128xbf16>
    %cst_13 = arith.constant dense<0.000000e+00> : vector<16x128xf32>
    %12 = tpu.matmul %9, %11, %cst_13 {dimension_numbers = #tpu.dot_dimension_numbers<[1], [0], [0], [1], [0, 0, 1, 1], [], []>} : vector<16x72xbf16>, vector<72x128xbf16>, vector<16x128xf32> -> vector<16x128xf32>
    %13 = arith.addf %7, %12 : vector<16x128xf32>
    %c0_14 = arith.constant 0 : index
    %c1 = arith.constant 1 : index
    %c0_15 = arith.constant 0 : index
    %14 = vector.load %arg7[%c0_14, %c1, %c0_15] : memref<1x18x72xbf16, #tpu.memory_space<vmem>>, vector<1x16x72xbf16>
    %15 = vector.shape_cast %14 : vector<1x16x72xbf16> to vector<16x72xbf16>
    %c1_16 = arith.constant 1 : index
    %c0_17 = arith.constant 0 : index
    %c0_18 = arith.constant 0 : index
    %16 = vector.load %arg2[%c1_16, %c0_17, %c0_18] : memref<3x72x128xbf16, #tpu.memory_space<vmem>>, vector<1x72x128xbf16>
    %17 = vector.shape_cast %16 : vector<1x72x128xbf16> to vector<72x128xbf16>
    %cst_19 = arith.constant dense<0.000000e+00> : vector<16x128xf32>
    %18 = tpu.matmul %15, %17, %cst_19 {dimension_numbers = #tpu.dot_dimension_numbers<[1], [0], [0], [1], [0, 0, 1, 1], [], []>} : vector<16x72xbf16>, vector<72x128xbf16>, vector<16x128xf32> -> vector<16x128xf32>
    %19 = arith.addf %13, %18 : vector<16x128xf32>
    %c0_20 = arith.constant 0 : index
    %c2 = arith.constant 2 : index
    %c0_21 = arith.constant 0 : index
    %20 = vector.load %arg7[%c0_20, %c2, %c0_21] : memref<1x18x72xbf16, #tpu.memory_space<vmem>>, vector<1x16x72xbf16>
    %21 = vector.shape_cast %20 : vector<1x16x72xbf16> to vector<16x72xbf16>
    %c2_22 = arith.constant 2 : index
    %c0_23 = arith.constant 0 : index
    %c0_24 = arith.constant 0 : index
    %22 = vector.load %arg2[%c2_22, %c0_23, %c0_24] : memref<3x72x128xbf16, #tpu.memory_space<vmem>>, vector<1x72x128xbf16>
    %23 = vector.shape_cast %22 : vector<1x72x128xbf16> to vector<72x128xbf16>
    %cst_25 = arith.constant dense<0.000000e+00> : vector<16x128xf32>
    %24 = tpu.matmul %21, %23, %cst_25 {dimension_numbers = #tpu.dot_dimension_numbers<[1], [0], [0], [1], [0, 0, 1, 1], [], []>} : vector<16x72xbf16>, vector<72x128xbf16>, vector<16x128xf32> -> vector<16x128xf32>
    %25 = arith.addf %19, %24 : vector<16x128xf32>
    %c0_26 = arith.constant 0 : index
    %c0_27 = arith.constant 0 : index
    %26 = vector.load %arg3[%c0_26, %c0_27] : memref<1x128xf32, #tpu.memory_space<vmem>>, vector<1x128xf32>
    %27 = vector.broadcast %26 : vector<1x128xf32> to vector<16x128xf32>
    %28 = arith.addf %25, %27 : vector<16x128xf32>
    %cst_28 = arith.constant 0.000000e+00 : f32
    %29 = vector.broadcast %cst_28 : f32 to vector<16x128xf32>
    %30 = arith.maximumf %28, %29 : vector<16x128xf32>
    %31 = vector.shape_cast %30 : vector<16x128xf32> to vector<1x16x128xf32>
    %cst_29 = arith.constant 0.000000e+00 : bf16
    %32 = vector.broadcast %cst_29 : bf16 to vector<1x16x8xbf16>
    %33 = arith.truncf %31 : vector<1x16x128xf32> to vector<1x16x128xbf16>
    %34 = tpu.concatenate %32, %33, %32 in 2 : vector<1x16x8xbf16>, vector<1x16x128xbf16>, vector<1x16x8xbf16> -> vector<1x16x144xbf16>
    %cst_30 = arith.constant 0.000000e+00 : bf16
    %35 = vector.broadcast %cst_30 : bf16 to vector<1x1x144xbf16>
    %36 = tpu.concatenate %35, %34, %35 in 1 : vector<1x1x144xbf16>, vector<1x16x144xbf16>, vector<1x1x144xbf16> -> vector<1x18x144xbf16>
    %c0_31 = arith.constant 0 : index
    %c0_32 = arith.constant 0 : index
    %c0_33 = arith.constant 0 : index
    %37 = vector.load %arg8[%c0_31, %c0_32, %c0_33] : memref<1x18x144xbf16, #tpu.memory_space<vmem>>, vector<1x18x144xbf16>
    tpu.vector_store %arg8[%c0_31, %c0_32, %c0_33], %36 {strides = array<i32>} : memref<1x18x144xbf16, #tpu.memory_space<vmem>>, vector<1x18x144xbf16>,
    %cst_34 = arith.constant 0.000000e+00 : f32
    %38 = vector.broadcast %cst_34 : f32 to vector<16x128xf32>
    %c0_35 = arith.constant 0 : index
    %c0_36 = arith.constant 0 : index
    %c0_37 = arith.constant 0 : index
    %39 = vector.load %arg8[%c0_35, %c0_36, %c0_37] : memref<1x18x144xbf16, #tpu.memory_space<vmem>>, vector<1x16x144xbf16>
    %40 = vector.shape_cast %39 : vector<1x16x144xbf16> to vector<16x144xbf16>
    %c0_38 = arith.constant 0 : index
    %c0_39 = arith.constant 0 : index
    %c0_40 = arith.constant 0 : index
    %41 = vector.load %arg4[%c0_38, %c0_39, %c0_40] : memref<3x144x128xbf16, #tpu.memory_space<vmem>>, vector<1x144x128xbf16>
    %42 = vector.shape_cast %41 : vector<1x144x128xbf16> to vector<144x128xbf16>
    %cst_41 = arith.constant dense<0.000000e+00> : vector<16x128xf32>
    %43 = tpu.matmul %40, %42, %cst_41 {dimension_numbers = #tpu.dot_dimension_numbers<[1], [0], [0], [1], [0, 0, 1, 1], [], []>} : vector<16x144xbf16>, vector<144x128xbf16>, vector<16x128xf32> -> vector<16x128xf32>
    %44 = arith.addf %38, %43 : vector<16x128xf32>
    %c0_42 = arith.constant 0 : index
    %c1_43 = arith.constant 1 : index
    %c0_44 = arith.constant 0 : index
    %45 = vector.load %arg8[%c0_42, %c1_43, %c0_44] : memref<1x18x144xbf16, #tpu.memory_space<vmem>>, vector<1x16x144xbf16>
    %46 = vector.shape_cast %45 : vector<1x16x144xbf16> to vector<16x144xbf16>
    %c1_45 = arith.constant 1 : index
    %c0_46 = arith.constant 0 : index
    %c0_47 = arith.constant 0 : index
    %47 = vector.load %arg4[%c1_45, %c0_46, %c0_47] : memref<3x144x128xbf16, #tpu.memory_space<vmem>>, vector<1x144x128xbf16>
    %48 = vector.shape_cast %47 : vector<1x144x128xbf16> to vector<144x128xbf16>
    %cst_48 = arith.constant dense<0.000000e+00> : vector<16x128xf32>
    %49 = tpu.matmul %46, %48, %cst_48 {dimension_numbers = #tpu.dot_dimension_numbers<[1], [0], [0], [1], [0, 0, 1, 1], [], []>} : vector<16x144xbf16>, vector<144x128xbf16>, vector<16x128xf32> -> vector<16x128xf32>
    %50 = arith.addf %44, %49 : vector<16x128xf32>
    %c0_49 = arith.constant 0 : index
    %c2_50 = arith.constant 2 : index
    %c0_51 = arith.constant 0 : index
    %51 = vector.load %arg8[%c0_49, %c2_50, %c0_51] : memref<1x18x144xbf16, #tpu.memory_space<vmem>>, vector<1x16x144xbf16>
    %52 = vector.shape_cast %51 : vector<1x16x144xbf16> to vector<16x144xbf16>
    %c2_52 = arith.constant 2 : index
    %c0_53 = arith.constant 0 : index
    %c0_54 = arith.constant 0 : index
    %53 = vector.load %arg4[%c2_52, %c0_53, %c0_54] : memref<3x144x128xbf16, #tpu.memory_space<vmem>>, vector<1x144x128xbf16>
    %54 = vector.shape_cast %53 : vector<1x144x128xbf16> to vector<144x128xbf16>
    %cst_55 = arith.constant dense<0.000000e+00> : vector<16x128xf32>
    %55 = tpu.matmul %52, %54, %cst_55 {dimension_numbers = #tpu.dot_dimension_numbers<[1], [0], [0], [1], [0, 0, 1, 1], [], []>} : vector<16x144xbf16>, vector<144x128xbf16>, vector<16x128xf32> -> vector<16x128xf32>
    %56 = arith.addf %50, %55 : vector<16x128xf32>
    %c0_56 = arith.constant 0 : index
    %c0_57 = arith.constant 0 : index
    %57 = vector.load %arg5[%c0_56, %c0_57] : memref<1x128xf32, #tpu.memory_space<vmem>>, vector<1x128xf32>
    %58 = vector.broadcast %57 : vector<1x128xf32> to vector<16x128xf32>
    %59 = arith.addf %56, %58 : vector<16x128xf32>
    %cst_58 = arith.constant 0.000000e+00 : f32
    %60 = vector.broadcast %cst_58 : f32 to vector<16x128xf32>
    %61 = arith.maximumf %59, %60 : vector<16x128xf32>
    %62 = vector.shape_cast %61 : vector<16x128xf32> to vector<1x16x128xf32>
    %63 = arith.truncf %62 : vector<1x16x128xf32> to vector<1x16x128xbf16>
    %c0_59 = arith.constant 0 : index
    %c0_60 = arith.constant 0 : index
    %c0_61 = arith.constant 0 : index
    %64 = vector.load %arg6[%c0_59, %c0_60, %c0_61] : memref<1x16x128xbf16, #tpu.memory_space<vmem>>, vector<1x16x128xbf16>
    tpu.vector_store %arg6[%c0_59, %c0_60, %c0_61], %63 {strides = array<i32>} : memref<1x16x128xbf16, #tpu.memory_space<vmem>>, vector<1x16x128xbf16>,
    return
  }
  func.func @transform_0(%arg0: i32) -> (i32, i32, i32) {
    %c0_i32 = arith.constant 0 : i32
    %c0_i32_0 = arith.constant 0 : i32
    %c0_i32_1 = arith.constant 0 : i32
    return %arg0, %c0_i32, %c0_i32_0 : i32, i32, i32
  }
  func.func @transform_1(%arg0: i32) -> (i32, i32, i32) {
    %c0_i32 = arith.constant 0 : i32
    %c0_i32_0 = arith.constant 0 : i32
    %c0_i32_1 = arith.constant 0 : i32
    %c0_i32_2 = arith.constant 0 : i32
    return %c0_i32, %c0_i32_0, %c0_i32_1 : i32, i32, i32
  }
  func.func @transform_2(%arg0: i32) -> (i32, i32) {
    %c0_i32 = arith.constant 0 : i32
    %c0_i32_0 = arith.constant 0 : i32
    %c0_i32_1 = arith.constant 0 : i32
    return %c0_i32, %c0_i32_0 : i32, i32
  }
  func.func @transform_3(%arg0: i32) -> (i32, i32, i32) {
    %c0_i32 = arith.constant 0 : i32
    %c0_i32_0 = arith.constant 0 : i32
    %c0_i32_1 = arith.constant 0 : i32
    %c0_i32_2 = arith.constant 0 : i32
    return %c0_i32, %c0_i32_0, %c0_i32_1 : i32, i32, i32
  }
  func.func @transform_4(%arg0: i32) -> (i32, i32) {
    %c0_i32 = arith.constant 0 : i32
    %c0_i32_0 = arith.constant 0 : i32
    %c0_i32_1 = arith.constant 0 : i32
    return %c0_i32, %c0_i32_0 : i32, i32
  }
  func.func @transform_5(%arg0: i32) -> (i32, i32, i32) {
    %c0_i32 = arith.constant 0 : i32
    %c0_i32_0 = arith.constant 0 : i32
    %c0_i32_1 = arith.constant 0 : i32
    return %arg0, %c0_i32, %c0_i32_0 : i32, i32, i32
  }
}

</mosaic_0001>

<bundles_post_ra>
// kernel: tpu_custom_call.1
= control target key start
LH: loop header
LB: loop body
LE: loop exit
PB: predicated region body
PF: predicated region fallthrough
CT: control target
= control target key end

     0   :  { %6 = vsyncpa [#allocation3], 0  ;;  %s125_s0 = inlined_call_operand.hbm [shape: f32[8,128], index: 0, kind: input, shape index: {}]   ;;  %s126_s1 = inlined_call_operand.hbm [shape: f32[8,128], index: 1, kind: output, shape index: {}]  }
   0x1   :  { %7 = vsyncpa [#allocation4], 0  ;;  %s89_s6 = smov [#allocation2]   ;;  %s41_s10 = scalar_lea.hbm %s125_s0, 128 }
   0x2   :  { %s14_s7 = sshll.u32 %s89_s6, 4  ;;  %p42_p0 = scmp.ne.s32.totalorder %s125_s0, %s41_s10  ;;  %s15_s7 = int_to_ptr.vmem [resolvable:$true] %s14_s7 }
   0x3   :  { %p45_p1 = scmp.lt.u32.totalorder %s41_s10, %s125_s0 }
   0x5   :  { %p47_p2 = pnand %p45_p1, %p42_p0 }
   0x7   :  { %50 = shalt.err (!%p47_p2)
}
   0x8   :  { %s51_s15 = scalar_lea.vmem %s15_s7, 128  ;;  %p56_p4 = scmp.lt.s32.totalorder %s15_s7, %s15_s7 }
   0x9   :  { %p52_p3 = scmp.ne.s32.totalorder %s15_s7, %s51_s15  ;;  %p57_p5 = scmp.lt.s32.totalorder %s51_s15, %s51_s15 }
   0xb   :  { %p58_p6 = por %p57_p5, %p56_p4 }
   0xd   :  { %p59_p7 = pnand %p58_p6, %p52_p3 }
   0xf   :  { %62 = shalt.err (!%p59_p7)
}
  0x10   :  { %17 = dma.hbm_to_vmem [thread:$0]  %s125_s0, 128, %s15_s7, [#allocation3]  }
  0x11   :  { %85 = dma.done.wait [#allocation3], 128  }
  0x12   :  { %86 = vsyncadd [#allocation3], 4294967168  ;;  %s90_s18 = smov [#allocation5]   ;;  %v21_v0 = vld [vmem:[#allocation2] sm:$0xff] }
  0x13   :  { %s30_s19 = sshll.u32 %s90_s18, 4  ;;  %v22_v1 = vadd.f32 1.0, %v21_v0  ;;  %s31_s19 = int_to_ptr.vmem [resolvable:$true] %s30_s19 }
  0x14   :  { %s63_s20 = scalar_lea.vmem %s31_s19, 128  ;;  %p68_p9 = scmp.lt.s32.totalorder %s31_s19, %s31_s19 }
  0x15   :  { %23 = vst [vmem:[#allocation5] sm:$0xff] %v22_v1  ;;  %p64_p8 = scmp.ne.s32.totalorder %s31_s19, %s63_s20  ;;  %p69_p10 = scmp.lt.s32.totalorder %s63_s20, %s63_s20 }
  0x17   :  { %p70_p11 = por %p69_p10, %p68_p9 }
  0x19   :  { %p71_p12 = pnand %p70_p11, %p64_p8 }
  0x1b   :  { %74 = shalt.err (!%p71_p12)
}
  0x1c   :  { %s75_s23 = scalar_lea.hbm %s126_s1, 128 }
  0x1d   :  { %p76_p13 = scmp.ne.s32.totalorder %s126_s1, %s75_s23  ;;  %p79_p0 = scmp.lt.u32.totalorder %s75_s23, %s126_s1 }
  0x1f   :  { %p81_p1 = pnand %p79_p0, %p76_p13 }
  0x21   :  { %84 = shalt.err (!%p81_p1)
}
  0x22   :  { %33 = dma.vmem_to_hbm [thread:$0]  %s31_s19, 128, %s126_s1, [#allocation4]  }
  0x23   :  { %87 = dma.done.wait [#allocation4], 128  }
  0x24   :  { %88 = vsyncadd [#allocation4], 4294967168 }
  0x25   :  { %37 = vsyncpa [#allocation3], 1 }
  0x26   :  { %38 = vsyncpa [#allocation4], 1 }

// kernel: tpu_custom_call.1
= control target key start
LH: loop header
LB: loop body
LE: loop exit
PB: predicated region body
PF: predicated region fallthrough
CT: control target
= control target key end

     0   :  { %10 = vsyncpa [#allocation5], 0  ;;  %s2006_s0 = inlined_call_operand.hbm [shape: f32[2,16,64], index: 0, kind: input, shape index: {}]   ;;  %s2007_s1 = inlined_call_operand.hbm [shape: bf16[3,72,128], index: 1, kind: input, shape index: {}]   ;;  %s2008_s2 = inlined_call_operand.vmem [shape: f32[1,128], index: 2, kind: input, shape index: {}]   ;;  %s2009_s3 = inlined_call_operand.hbm [shape: bf16[3,144,128], index: 3, kind: input, shape index: {}]   ;;  %s2010_s4 = inlined_call_operand.vmem [shape: f32[1,128], index: 4, kind: input, shape index: {}]   ;;  %s2011_s5 = inlined_call_operand.hbm [shape: bf16[2,16,128], index: 5, kind: output, shape index: {}]  }
   0x1   :  { %12 = vsyncpa [#allocation5 + $0x1], 0 }
   0x2   :  { %13 = vsyncpa [#allocation8], 0 }
   0x3   :  { %14 = vsyncpa [#allocation6], 0 }
   0x4   :  { %16 = vsyncpa [#allocation6 + $0x1], 0  ;;  %s1681_s18 = smov 0   ;;  %s1683_s19 = smov 0  }
   0x5   :  { %s1685_s20 = smov 0   ;;  %s1687_s21 = smov 0  }
   0x6 LB: > { %s1702_s22 = sadd.s32 4294967295, %s1635_s21   ;;  %s1197_s23 = sadd.s32 4294967294, %s1635_s21   ;;  %s1635_s21 = sphi %s1687_s21, %s2033_s21   ;;  %s1631_s20 = sphi %s1685_s20, %s2032_s20   ;;  %s1627_s19 = sphi %s1683_s19, %s2031_s19   ;;  %s1623_s18 = sphi %s1681_s18, %s2030_s18  }
   0x7   : > { %p42_p0 = scmp.ne.s32.totalorder %s1627_s19, %s1623_s18  ;;  %p2012_p1 = scmp.eq.s32.totalorder %s1702_s22, 0 }
   0x8   : > { %p156_p3 = scmp.eq.s32.totalorder %s1197_s23, 1  ;;  %p1198_p5 = scmp.ge.s32.totalorder %s1635_s21, 1 }
   0x9   : > { %p1711_p4 = por %p2012_p1, %p42_p0  ;;  %p163_p7 = scmp.lt.s32.totalorder %s1635_s21, 3 }
   0xa   : > { %p1716_p6 = por %p156_p3, %p42_p0  ;;  %s1637_s27 = smov [#allocation7]  }
   0xb   : > { %s2015_s24 = scalar_select %p1711_p4, 1, 0 }
   0xc   : > { %s2016_s25 = scalar_select %p1716_p6, 1, 0 }
   0xd   : > { %p1721_p8 = pnand %p1198_p5, %p163_p7  ;;  %s175_s28 = sshll.u32 %s1637_s27, 4  ;;  %s1725_s28 = int_to_ptr.vmem [resolvable:$true] %s175_s28 }
   0xe   : > { %s1638_s30 = smov [#allocation9]   ;;  %s1479_s9 = scalar_lea.hbm %s2007_s1, 1728 }
   0xf   : > { %p1363_p9 = pneg %p1721_p8  ;;  %s191_s6 = sshll.u32 %s1638_s30, 4  ;;  %s1736_s6 = int_to_ptr.vmem [resolvable:$true] %s191_s6 }
  0x10   : > { %p1480_p12 = scmp.ne.s32.totalorder %s2007_s1, %s1479_s9  ;;  %p1486_p5 = scmp.lt.u32.totalorder %s1479_s9, %s2007_s1 }
  0x11   : > { %p1732_p11 = pnand %p1363_p9, %p2012_p1 }
  0x13   : > { %p1481_p13 = pneg %p1732_p11 }
  0x15   : > { %p1482_p0 = pnand %p1481_p13, %p1480_p12 }
  0x17   : > { %p1483_p3 = pneg %p1482_p0 }
  0x19   : > { %p1488_p7 = pnand %p1486_p5, %p1483_p3 }
  0x1b   : > { %1491 = shalt.err (!%p1488_p7)
}
  0x1c   : > { %s1492_s14 = scalar_lea.vmem %s1725_s28, 1728  ;;  %p1500_p2 = scmp.lt.s32.totalorder %s1725_s28, %s1725_s28 }
  0x1d   : > { %p1493_p9 = scmp.ne.s32.totalorder %s1725_s28, %s1492_s14  ;;  %p1501_p12 = scmp.lt.s32.totalorder %s1492_s14, %s1492_s14 }
  0x1f   : > { %p1495_p10 = pnand %p1493_p9, %p1481_p13  ;;  %p1502_p0 = por %p1501_p12, %p1500_p2 }
  0x21   : > { %p1496_p1 = pneg %p1495_p10 }
  0x23   : > { %p1503_p6 = pnand %p1502_p0, %p1496_p1 }
  0x25   : > { %1506 = shalt.err (!%p1503_p6)
}
  0x26   : > { %s1639_s15 = smov 64   ;;  %s1640_s16 = smov 4  }
  0x27   : > { %1366 = dma.hbm_to_vmem [thread:$0]  (!%p1732_p11), %s2007_s1, 1728, %s1725_s28, [#allocation8], %s1639_s15, %s1639_s15, %s1640_s16  }
  0x28   : > { %s1507_s7 = scalar_lea.hbm %s2009_s3, 3456 }
  0x29   : > { %p1508_p2 = scmp.ne.s32.totalorder %s2009_s3, %s1507_s7  ;;  %p1514_p10 = scmp.lt.u32.totalorder %s1507_s7, %s2009_s3 }
  0x2b   : > { %p1510_p1 = pnand %p1508_p2, %p1481_p13 }
  0x2d   : > { %p1511_p6 = pneg %p1510_p1 }
  0x2f   : > { %p1516_p3 = pnand %p1514_p10, %p1511_p6 }
  0x31   : > { %1519 = shalt.err (!%p1516_p3)
}
  0x32   : > { %s1520_s28 = scalar_lea.vmem %s1736_s6, 3456  ;;  %p1528_p12 = scmp.lt.s32.totalorder %s1736_s6, %s1736_s6 }
  0x33   : > { %p1521_p5 = scmp.ne.s32.totalorder %s1736_s6, %s1520_s28  ;;  %p1529_p0 = scmp.lt.s32.totalorder %s1520_s28, %s1520_s28 }
  0x35   : > { %p1523_p7 = pnand %p1521_p5, %p1481_p13  ;;  %p1530_p2 = por %p1529_p0, %p1528_p12 }
  0x37   : > { %p1524_p9 = pneg %p1523_p7 }
  0x39   : > { %p1531_p1 = pnand %p1530_p2, %p1524_p9 }
  0x3b   : > { %1534 = shalt.err (!%p1531_p1)
}
  0x3c   : > { %1369 = dma.hbm_to_vmem [thread:$0]  (!%p1732_p11), %s2009_s3, 3456, %s1736_s6, [#allocation8], %s1639_s15, %s1639_s15, %s1640_s16  }
  0x3d   : > { %s1791_s14 = sadd.s32 1, %s1635_s21   ;;  %s29_s29 = sadd.s32 1, %s1631_s20 }
  0x3e   : > { %s26_s17 = ssub.s32 %s1635_s21, %s1791_s14  ;;  %p36_p13 = scmp.ne.s32.totalorder %s1631_s20, %s1627_s19 }
  0x3f   : > { %p27_p6 = scmp.eq.s32.totalorder %s26_s17, 0  ;;  %p37_p10 = scmp.eq.s32.totalorder %s1635_s21, 0 }
  0x40   : > { %p2019_p3 = scmp.eq.s32.totalorder %s1702_s22, 1  ;;  %p1380_p7 = scmp.lt.s32.totalorder %s1635_s21, 2 }
  0x41   : > { %s1807_s27 = scalar_select %p27_p6, %s1631_s20, %s29_s29  }
  0x42   : > { %p1801_p5 = por %p2019_p3, %p36_p13  ;;  %p38_p9 = por %p37_p10, %p36_p13 }
  0x43   : > { %s208_s30 = sand.u32 1, %s1631_s20   ;;  %s1282_s6 = sshll.u32 %s1635_s21, 8 }
  0x44   : > { %s2020_s23 = scalar_select %p1801_p5, 1, 0 }
  0x45   : > { %s1202_s7 = sshll.u32 %s208_s30, 4  ;;  %s1814_s8 = scalar_lea.hbm %s2006_s0, %s1282_s6 }
  0x46   : > { %s212_s9 = scalar_lea.vmem [#allocation4], %s1202_s7  ;;  %p1818_p11 = pnand %p1380_p7, %p38_p9 }
  0x47   : > { %s219_s10 = sshll.u32 %s212_s9, 4  ;;  %s1822_s28 = scalar_lea.sflag [#allocation5], %s208_s30  ;;  %s1816_s10 = int_to_ptr.vmem [resolvable:$true] %s219_s10 }
  0x48   : > { %s1535_s12 = scalar_lea.hbm %s1814_s8, 256  ;;  %p1537_p0 = pneg %p1818_p11 }
  0x49   : > { %p1536_p12 = scmp.ne.s32.totalorder %s1814_s8, %s1535_s12  ;;  %s1540_s17 = scalar_lea.hbm %s2006_s0, 512 }
  0x4a   : > { %p1541_p13 = scmp.lt.u32.totalorder %s1814_s8, %s2006_s0  ;;  %p1542_p6 = scmp.lt.u32.totalorder %s1540_s17, %s1535_s12 }
  0x4b   : > { %p1538_p2 = pnand %p1537_p0, %p1536_p12  ;;  %p1544_p3 = scmp.lt.u32.totalorder %s1535_s12, %s1814_s8 }
  0x4c   : > { %p1543_p10 = por %p1542_p6, %p1541_p13 }
  0x4d   : > { %p1539_p1 = pneg %p1538_p2 }
  0x4e   : > { %p1545_p7 = por %p1544_p3, %p1543_p10 }
  0x50   : > { %p1546_p9 = pnand %p1545_p7, %p1539_p1 }
  0x52   : > { %1549 = shalt.err (!%p1546_p9)
}
  0x53   : > { %s1550_s30 = scalar_lea.vmem %s1816_s10, 256  ;;  %s1641_s15 = smov [#allocation4]  }
  0x54   : > { %p1551_p12 = scmp.ne.s32.totalorder %s1816_s10, %s1550_s30  ;;  %s1555_s16 = sshll.u32 %s1641_s15, 4  ;;  %s1556_s16 = int_to_ptr.vmem [resolvable:$false] %s1555_s16 }
  0x55   : > { %s1557_s9 = scalar_lea.vmem %s1556_s16, 512  ;;  %p1558_p4 = scmp.lt.s32.totalorder %s1816_s10, %s1556_s16 }
  0x56   : > { %p1553_p2 = pnand %p1551_p12, %p1537_p0  ;;  %p1559_p13 = scmp.lt.s32.totalorder %s1557_s9, %s1550_s30 }
  0x58   : > { %p1554_p5 = pneg %p1553_p2  ;;  %p1560_p6 = por %p1559_p13, %p1558_p4 }
  0x5a   : > { %p1561_p10 = pnand %p1560_p6, %p1554_p5 }
  0x5c   : > { %1564 = shalt.err (!%p1561_p10)
}
  0x5d   : > { %s1642_s12 = smov 128   ;;  %s1643_s13 = smov 8  }
  0x5e   : > { %1373 = dma.hbm_to_vmem [thread:$0]  (!%p1818_p11), %s1814_s8, 256, %s1816_s10, %s1822_s28, %s1642_s12, %s1642_s12, %s1643_s13  }
  0x5f   : > { %231 = sbr.rel (%p1721_p8) target bundleno = 910 (0x38e), region = 40  ;;  %s1853_s29 = sand.u32 (!%p1721_p8), 1, %s1627_s19  }
  0x60   : > { %s1206_s17 = sshll.u32 (!%p1721_p8), %s1853_s29, 4  ;;  %s234_s7 = scalar_lea.sflag (!%p1721_p8), [#allocation5], %s1853_s29 }
  0x61   : > { %s237_s6 = scalar_lea.vmem (!%p1721_p8), [#allocation4], %s1206_s17  ;;  %p2022_p4 = scmp.ne.s32.totalorder (!%p1721_p8), %s2015_s24, 0 }
  0x66   : > { %1610 = dma.done.wait (%p2022_p4), %s234_s7, 256  }
  0x67   : > { %1612 = vsyncadd (%p2022_p4), %s234_s7, 4294967040  ;;  %p2023_p5 = scmp.eq.s32.totalorder %s1702_s22, 0 }
  0x69   : > { %1614 = dma.done.wait (%p2023_p5), [#allocation8], 5184   ;;  %p2024_p11 = pmov %p2023_p5 }
  0x6a   : > { %v1644_v0 = vmov 0.0   ;;  %v273_v1 = vld [vmem:[%s237_s6] sm:$0xff]  ;;  %v274_v2 = vld [vmem:[%s237_s6 + $0x8] sm:$0xff]  ;;  %s1645_s26 = smov 4   ;;  %vm1646_vm0 = vmmov 0   ;;  %vm388_vm1 = vcmask 1043456  }
  0x6b   : > { %1616 = vsyncadd (%p2024_p11), [#allocation8], 4294962112  ;;  %1323 = vmatprep.subr.bf16.mxu1 %v1644_v0  ;;  %1309 = vmatprep.subr.bf16.mxu0 %v1644_v0  ;;  %v275_v3 = vpack.c.bf16 %v274_v2, %v273_v1  ;;  %v1428_v4 = vld [vmem:[#allocation7] sm:$0xff]   ;;  %v1429_v5 = vld [vmem:[#allocation7 + $0x8] sm:$0xff]   ;;  %vm279_vm2 = vcmask 31744   ;;  %vm283_vm3 = vcmask 556032  }
  0x6c   : > { %1324 = vmatpush3.bf16.msra.mxu1 %v1428_v4  ;;  %v1430_v6 = vld [vmem:[#allocation7 + $0x24] sm:$0xff]   ;;  %1333 = vmatprep.mubr.msk.bf16.mxu1 %vm1646_vm0, %v1644_v0  ;;  %v1432_v7 = vld [vmem:[#allocation7 + $0x2c] sm:$0xff]   ;;  %v1435_v9 = vld [vmem:[#allocation7 + $0x20] ss:$0 sps:$4 sm:$0xff]   ;;  %vm293_vm4 = vcmask 1040384   ;;  %vm312_vm7 = vcmask 581632  }
  0x6d   : > { %277 = vrot.lane.b32.xlu0 %v275_v3, %s1645_s26  ;;  %1325 = vmatprep.subr.bf16.mxu1 %v1644_v0  ;;  %v1431_v8 = vld [vmem:[#allocation7 + $0x10] sm:$0xff]   ;;  %v1433_v11 = vld [vmem:[#allocation7 + $0x18] sm:$0xff]   ;;  %v463_v12 = vsel %vm388_vm1, %v1435_v9, 0  ;;  %v1439_v14 = vld [vmem:[#allocation7 + $0x44] ss:$0 sps:$4 sm:$0xff]   ;;  %vm309_vm8 = vcmask 584704  }
  0x6e   : > { %1310 = vmatpush3.bf16.msra.mxu0 %v1430_v6  ;;  %1319 = vmatprep.mubr.msk.bf16.mxu0 %vm1646_vm0, %v1644_v0  ;;  %v1434_v10 = vld [vmem:[#allocation7 + $0x34] sm:$0xff]   ;;  %v1436_v13 = vld [vmem:[#allocation7 + $0x3c] sm:$0xff]   ;;  %v390_v15 = vsel %vm388_vm1, %v1439_v14, 0  ;;  %vm294_vm5 = vsmask.f32 256  ;;  %vm384_vm9 = vcmask 588800  }
  0x6f   : > { %1311 = vmatprep.subr.bf16.mxu0 %v1644_v0  ;;  %vm1884_vm6 = vmand %vm293_vm4, %vm294_vm5  ;;  %vm344_vm10 = vsmask.f32 7424  ;;  %v1441_v39 = vld [vmem:[#allocation7 + $0x48] sm:$0xff]   ;;  %v1442_v41 = vld [vmem:[#allocation7 + $0x50] sm:$0xff]   ;;  %vm520_vm11 = vcmask 1046528   ;;  %v1647_v53 = vmov 0  }
  0x70   : > { %1326 = vmatpush3.bf16.msra.mxu1 %v1429_v5  ;;  %v1443_v42 = vld [vmem:[#allocation7 + $0x58] sm:$0xff]   ;;  %v1444_v44 = vld [vmem:[#allocation7 + $0x60] sm:$0xff]   ;;  %v1445_v45 = vld [vmem:[#allocation7 + $0x68] ss:$0 sps:$4 sm:$0xff]   ;;  %s1648_s10 = smov 8   ;;  %vm615_vm12 = vcmask 64512  }
  0x71   : > { %1327 = vmatprep.subr.bf16.mxu1 %v1644_v0  ;;  %v555_v47 = vsel %vm388_vm1, %v1445_v45, 0  ;;  %v1446_v51 = vld [vmem:[#allocation9] sm:$0xff]   ;;  %v1448_v52 = vld [vmem:[#allocation9 + $0x48] sm:$0xff]   ;;  %v1450_v55 = vld [vmem:[#allocation9 + $0x50] sm:$0xff]   ;;  %vm660_vm13 = vcmask 126980   ;;  %vm655_vm14 = vcmask 130052  }
  0x72   : > { %1312 = vmatpush3.bf16.msra.mxu0 %v1432_v7  ;;  %v1447_v54 = vld [vmem:[#allocation9 + $0x8] sm:$0xff]   ;;  %v1449_v56 = vld [vmem:[#allocation9 + $0x10] sm:$0xff]   ;;  %v1451_v57 = vld [vmem:[#allocation9 + $0x18] sm:$0xff]   ;;  %s1209_s30 = sshll.u32 %s1853_s29, 3  ;;  %s1285_s15 = sshll.u32 %s1702_s22, 7 }
  0x73   : > { %1313 = vmatprep.subr.bf16.mxu0 %v1644_v0  ;;  %v1452_v4 = vld [vmem:[#allocation9 + $0x58] sm:$0xff]   ;;  %v1453_v5 = vld [vmem:[#allocation9 + $0x20] sm:$0xff]   ;;  %v1234_v7 = vld [vmem:[%s2008_s2] ss:$0 sm:$0xff]  ;;  %s271_s16 = scalar_lea.vmem [#allocation10], %s1209_s30  ;;  %s1959_s17 = scalar_lea.hbm %s2011_s5, %s1285_s15 }
  0x74   : > { %1328 = vmatpush3.bf16.msra.mxu1 %v1431_v8  ;;  %v1454_v8 = vld [vmem:[#allocation9 + $0x60] sm:$0xff]   ;;  %vm661_vm15 = vmor %vm660_vm13, %vm293_vm4  ;;  %s1105_s9 = sshll.u32 %s271_s16, 4  ;;  %s1092_s7 = scalar_lea.sflag [#allocation6], %s1853_s29  ;;  %s1961_s9 = int_to_ptr.vmem [resolvable:$true] %s1105_s9 }
  0x75   : > { %1329 = vmatprep.subr.bf16.mxu1 %v1644_v0  ;;  %s1565_s6 = scalar_lea.vmem %s1961_s9, 128  ;;  %p2027_p0 = scmp.ne.s32.totalorder %s2020_s23, 0 }
  0x76   : > { %1314 = vmatpush3.bf16.msra.mxu0 %v1434_v10  ;;  %p1566_p8 = scmp.ne.s32.totalorder %s1961_s9, %s1565_s6  ;;  %s1649_s22 = smov [#allocation10]  }
  0x77   : > { %1315 = vmatprep.subr.bf16.mxu0 %v1644_v0  ;;  %s1569_s24 = sshll.u32 %s1649_s22, 4  ;;  %s1570_s24 = int_to_ptr.vmem [resolvable:$false] %s1569_s24 }
  0x78   : > { %1330 = vmatpush3.bf16.msra.mxu1 %v1433_v11  ;;  %p1567_p1 = pnand %p1566_p8, %p2027_p0  ;;  %s1571_s8 = scalar_lea.vmem %s1570_s24, 256 }
  0x79   : > { %1331 = vmatprep.subr.bf16.mxu1 %v1644_v0  ;;  %p1572_p7 = scmp.lt.s32.totalorder %s1961_s9, %s1570_s24  ;;  %p1573_p9 = scmp.lt.s32.totalorder %s1571_s8, %s1565_s6 }
  0x7a   : > { %1316 = vmatpush3.bf16.msra.mxu0 %v1436_v13  ;;  %p1568_p3 = pneg %p1567_p1 }
  0x7b   : > { %1317 = vmatprep.subr.bf16.mxu0 %v1644_v0  ;;  %p1574_p12 = por %p1573_p9, %p1572_p7 }
  0x7c   : > { %1332 = vmatpush3.bf16.msra.mxu1 %v463_v12  ;;  %v1455_v12 = vld [vmem:[#allocation9 + $0x28] sm:$0xff]  }
  0x7d   : > { %799 = vmatprep.subr.bf16.mxu1 %v1647_v53  ;;  %p1575_p2 = pnand %p1574_p12, %p1568_p3 }
  0x7e   : > { %1318 = vmatpush3.bf16.msra.mxu0 %v390_v15 }
  0x7f   : > { %1337 = vmatprep.subr.bf16.mxu0 %v1644_v0 }
  0xdf   : > { %v278_v16 = vpop.permute.xlu0 %277 }
  0xe0   : > { %v282_v17 = vsel %vm279_vm2, 0, %v278_v16  ;;  %v1456_v16 = vld [vmem:[#allocation9 + $0x68] sm:$0xff]   ;;  %vm795_vm2 = vcmask 130048  }
  0xe1   : > { %v284_v18 = vsel %vm283_vm3, %v282_v17, 0 }
  0xe2   : > { %v285_v19 = vshrl.u32 %v284_v18, 16  ;;  %v288_v22 = vshll.u32 %v284_v18, 16  ;;  %v1457_v18 = vld [vmem:[#allocation9 + $0x30] sm:$0xff]  }
  0xe4   : > { %v287_v21 = vrot.slane %v285_v19, 7 }
  0xe6   : > { %v290_v23 = vor.u32 %v288_v22, %v287_v21  ;;  %v297_v24 = vsel %vm1884_vm6, %v287_v21, 0  ;;  %v1458_v22 = vld [vmem:[#allocation9 + $0x70] sm:$0xff]  }
  0xe7   : > { %v1212_v25 = vcombine.low %v297_v24, %v297_v24 }
  0xe8   : > { %v296_v26 = vsel %vm1884_vm6, 0, %v290_v23  ;;  %v1459_v23 = vld [vmem:[#allocation9 + $0x38] sm:$0xff]  }
  0xe9   : > { %v1210_v27 = vcombine.low %v296_v26, %v296_v26  ;;  %v1211_v28 = vcombine.high %v296_v26, %v296_v26  ;;  %313 = vst.msk [vmem:[#allocation2 + $0x8] sm:$0x1] %vm312_vm7, %v1212_v25  ;;  %v1460_v25 = vld [vmem:[#allocation9 + $0x78] sm:$0xff]   ;;  %v1461_v26 = vld [vmem:[#allocation9 + $0x40] sm:$0xff]  }
  0xeb   : > { %310 = vst.msk [vmem:[#allocation2] sm:$0xf] %vm309_vm8, %v1210_v27  ;;  %311 = vst.msk [vmem:[#allocation2 + $0x4] sm:$0xf] %vm309_vm8, %v1211_v28  ;;  %v1462_v27 = vld [vmem:[#allocation9 + $0x80] sm:$0xff]   ;;  %v1465_v28 = vld [vmem:[#allocation9 + $0x88] sm:$0xff]  }
  0xf0   : > { %v1440_v29 = vld [vmem:[#allocation2 + $0x8] ss:$0 sps:$4 sm:$0x11]  }
  0xf1   : > { %v353_v34 = vshll.u32 %v1440_v29, 16  ;;  %v522_v49 = vrot.slane %v1440_v29, 1 }
  0xf2   : > { %v314_v30 = vld [vmem:[#allocation2] sm:$0xf]  ;;  %v315_v31 = vld [vmem:[#allocation2 + $0x4] sm:$0xf] }
  0xf3   : > { %v1213_v32 = vcombine.low %v314_v30, %v315_v31  ;;  %v355_v38 = vrot.slane %v353_v34, 1  ;;  %v506_v43 = vld [vmem:[#allocation2] sm:$0xe] }
  0xf4   : > { %v1227_v46 = vcombine.low %v506_v43, %v315_v31 }
  0xf5   : > { %1334 = vmatmul.mubr.msk.bf16.vlgmr.msra.gmra.mrb[0].mxu1 %vm384_vm9, %v1213_v32  ;;  %v348_v33 = vshll.u32 %v1213_v32, 16  ;;  %v346_v35 = vshrl.u32 %v1213_v32, 16 }
  0xf6   : > { %v521_v48 = vrot.slane %v1227_v46, 1  ;;  %800 = vmatpush1.bf16.msra.mxu1 %v1448_v52 }
  0xf7   : > { %v350_v36 = vrot.slane %v348_v33, 1  ;;  %801 = vmatprep.subr.bf16.mxu1 %v1647_v53 }
  0xf8   : > { %v523_v50 = vsel %vm520_vm11, %v521_v48, %v522_v49 }
  0xf9   : > { %v351_v37 = vor.u32 %v350_v36, %v346_v35 }
  0xfa   : > { %802 = vmatpush1.bf16.msra.mxu1 %v1450_v55 }
  0xfb   : > { %v356_v40 = vsel %vm344_vm10, %v351_v37, %v355_v38  ;;  %803 = vmatprep.subr.bf16.mxu1 %v1647_v53 }
  0xfc   : > { %1320 = vmatmul.mubr.msk.bf16.vlgmr.msra.gmra.mrb[0].mxu0 %vm384_vm9, %v356_v40 }
  0xfd   : > { %1338 = vmatpush3.bf16.msra.mxu0 %v1441_v39  ;;  %1347 = vmatprep.mubr.msk.bf16.mxu0 %vm1646_vm0, %v1644_v0  ;;  %vm656_vm0 = vmor %vm655_vm14, %vm388_vm1 }
  0xfe   : > { %1339 = vmatprep.subr.bf16.mxu0 %v1644_v0  ;;  %804 = vmatpush1.bf16.msra.mxu1 %v1452_v4 }
  0xff   : > { %805 = vmatprep.subr.bf16.mxu1 %v1647_v53 }
 0x101   : > { %1340 = vmatpush3.bf16.msra.mxu0 %v1442_v41 }
 0x102   : > { %1341 = vmatprep.subr.bf16.mxu0 %v1644_v0  ;;  %806 = vmatpush1.bf16.msra.mxu1 %v1454_v8 }
 0x103   : > { %807 = vmatprep.subr.bf16.mxu1 %v1647_v53 }
 0x105   : > { %1342 = vmatpush3.bf16.msra.mxu0 %v1443_v42 }
 0x106   : > { %1343 = vmatprep.subr.bf16.mxu0 %v1644_v0  ;;  %808 = vmatpush1.bf16.msra.mxu1 %v1456_v16  ;;  %v1476_v16 = vld [vmem:[#allocation9 + $0xc8] sm:$0xff]  }
 0x107   : > { %809 = vmatprep.subr.bf16.mxu1 %v1647_v53 }
 0x109   : > { %1344 = vmatpush3.bf16.msra.mxu0 %v1444_v44 }
 0x10a   : > { %1345 = vmatprep.subr.bf16.mxu0 %v1644_v0  ;;  %810 = vmatpush1.bf16.msra.mxu1 %v1458_v22 }
 0x10b   : > { %811 = vmatprep.subr.bf16.mxu1 %v1647_v53 }
 0x10d   : > { %1346 = vmatpush3.bf16.msra.mxu0 %v555_v47 }
 0x10e   : > { %897 = vmatprep.subr.bf16.mxu0 %v1647_v53  ;;  %812 = vmatpush1.bf16.msra.mxu1 %v1460_v25 }
 0x10f   : > { %813 = vmatprep.subr.bf16.mxu1 %v1647_v53 }
 0x110   : > { %1348 = vmatmul.mubr.msk.bf16.vlgmr.msra.gmra.mrb[4].mxu0 %vm384_vm9, %v523_v50 }
 0x111   : > { %898 = vmatpush1.bf16.msra.mxu0 %v1446_v51 }
 0x112   : > { %899 = vmatprep.subr.bf16.mxu0 %v1647_v53  ;;  %814 = vmatpush1.bf16.msra.mxu1 %v1462_v27 }
 0x113   : > { %815 = vmatprep.subr.bf16.mxu1 %v1647_v53 }
 0x115   : > { %900 = vmatpush1.bf16.msra.mxu0 %v1447_v54 }
 0x116   : > { %901 = vmatprep.subr.bf16.mxu0 %v1647_v53  ;;  %816 = vmatpush1.bf16.msra.mxu1 %v1465_v28 }
 0x117   : > { %1027 = vmatprep.subr.bf16.mxu1 %v1647_v53 }
 0x119   : > { %902 = vmatpush1.bf16.msra.mxu0 %v1449_v56 }
 0x11a   : > { %903 = vmatprep.subr.bf16.mxu0 %v1647_v53 }
 0x11d   : > { %904 = vmatpush1.bf16.msra.mxu0 %v1451_v57 }
 0x11e   : > { %905 = vmatprep.subr.bf16.mxu0 %v1647_v53 }
 0x121   : > { %906 = vmatpush1.bf16.msra.mxu0 %v1453_v5  ;;  %v1468_v5 = vld [vmem:[#allocation9 + $0x90] sm:$0xff]  }
 0x122   : > { %907 = vmatprep.subr.bf16.mxu0 %v1647_v53 }
 0x125   : > { %908 = vmatpush1.bf16.msra.mxu0 %v1455_v12  ;;  %v1472_v12 = vld [vmem:[#allocation9 + $0xa8] sm:$0xff]  }
 0x126   : > { %909 = vmatprep.subr.bf16.mxu0 %v1647_v53 }
 0x129   : > { %910 = vmatpush1.bf16.msra.mxu0 %v1457_v18  ;;  %v1477_v18 = vld [vmem:[#allocation9 + $0xd0] sm:$0xff]  }
 0x12a   : > { %911 = vmatprep.subr.bf16.mxu0 %v1647_v53 }
 0x12d   : > { %912 = vmatpush1.bf16.msra.mxu0 %v1459_v23 }
 0x12e   : > { %913 = vmatprep.subr.bf16.mxu0 %v1647_v53 }
 0x131   : > { %914 = vmatpush1.bf16.msra.mxu0 %v1461_v26 }
 0x1c8   : > { %v499_v58 = vpop.f32.mrb[0].mxu1 }
 0x1c9   : > { %v1335_v59 = vpop.f32.mrb[1].mxu1 }
 0x1ca   : > { %v502_v60 = vpop.f32.mrb[2].mxu1 }
 0x1cb   : > { %v1336_v61 = vpop.f32.mrb[3].mxu1 }
 0x1cf   : > { %v426_v62 = vpop.f32.mrb[0].mxu0 }
 0x1d0   : > { %v500_v63 = vadd.f32 %v499_v58, %v426_v62  ;;  %v1321_v0 = vpop.f32.mrb[1].mxu0 }
 0x1d1   : > { %v429_v1 = vpop.f32.mrb[2].mxu0 }
 0x1d2   : > { %v503_v2 = vadd.f32 %v502_v60, %v429_v1  ;;  %v1322_v3 = vpop.f32.mrb[3].mxu0 }
 0x1e3   : > { %v591_v6 = vpop.f32.mrb[4].mxu0 }
 0x1e4   : > { %v598_v9 = vadd.f32 %v591_v6, %v500_v63  ;;  %v1349_v10 = vpop.f32.mrb[5].mxu0 }
 0x1e5   : > { %v594_v11 = vpop.f32.mrb[6].mxu0  ;;  %v1470_v10 = vld [vmem:[#allocation9 + $0x98] sm:$0xff]  }
 0x1e6   : > { %v607_v13 = vadd.f32 %v1234_v7, %v598_v9  ;;  %v599_v14 = vadd.f32 %v594_v11, %v503_v2  ;;  %v1350_v15 = vpop.f32.mrb[7].mxu0  ;;  %v1471_v11 = vld [vmem:[#allocation9 + $0xa0] sm:$0xff]  }
 0x1e7   : > { %v1475_v15 = vld [vmem:[#allocation9 + $0xc0] sm:$0xff]  }
 0x1e8   : > { %v608_v17 = vadd.f32 %v1234_v7, %v599_v14  ;;  %v609_v19 = vmax.f32 %v607_v13, 0.0  ;;  %v1473_v13 = vld [vmem:[#allocation9 + $0xb0] sm:$0xff]   ;;  %v1474_v14 = vld [vmem:[#allocation9 + $0xb8] sm:$0xff]  }
 0x1ea   : > { %v610_v21 = vmax.f32 %v608_v17, 0.0 }
 0x1ec   : > { %v611_v24 = vpack.c.bf16 %v610_v21, %v609_v19 }
 0x1ee   : > { %613 = vrot.lane.b32.xlu0 %v611_v24, %s1648_s10 }
 0x260   : > { %v614_v29 = vpop.permute.xlu0 %613 }
 0x261   : > { %v617_v30 = vsel %vm615_vm12, 0, %v614_v29  ;;  %v618_v31 = vsel %vm615_vm12, %v614_v29, 0 }
 0x262   : > { %v619_v32 = vshrl.u32 %v617_v30, 16  ;;  %v625_v33 = vshrl.u32 %v618_v31, 16  ;;  %v622_v35 = vshll.u32 %v617_v30, 16  ;;  %v628_v37 = vshll.u32 %v618_v31, 16 }
 0x264   : > { %v621_v34 = vrot.slane %v619_v32, 7  ;;  %v627_v36 = vrot.slane %v625_v33, 7 }
 0x266   : > { %v624_v38 = vor.u32 %v622_v35, %v621_v34  ;;  %v630_v39 = vor.u32 %v628_v37, %v627_v36  ;;  %v637_v40 = vsel %vm1884_vm6, %v621_v34, 0  ;;  %v638_v41 = vsel %vm1884_vm6, %v627_v36, 0 }
 0x267   : > { %v1237_v42 = vcombine.low %v637_v40, %v638_v41 }
 0x268   : > { %v635_v43 = vsel %vm1884_vm6, 0, %v624_v38  ;;  %v636_v44 = vsel %vm1884_vm6, 0, %v630_v39 }
 0x269   : > { %v1235_v45 = vcombine.low %v635_v43, %v636_v44  ;;  %v1236_v46 = vcombine.high %v635_v43, %v636_v44  ;;  %662 = vst.msk [vmem:[#allocation3 + $0x10] sm:$0x11] %vm661_vm15, %v1237_v42 }
 0x26b   : > { %657 = vst.msk [vmem:[#allocation3] sm:$0xff] %vm656_vm0, %v1235_v45  ;;  %658 = vst.msk [vmem:[#allocation3 + $0x8] sm:$0xff] %vm656_vm0, %v1236_v46 }
 0x270   : > { %v683_v47 = vld [vmem:[#allocation3 + $0x10] sm:$0x11] }
 0x271   : > { %v1241_v48 = vcombine.high %v683_v47, %v683_v47  ;;  %v1240_v51 = vcombine.low %v683_v47, %v683_v47 }
 0x272   : > { %v663_v49 = vld [vmem:[#allocation3] sm:$0xff]  ;;  %v664_v50 = vld [vmem:[#allocation3 + $0x8] sm:$0xff] }
 0x273   : > { %v938_v52 = vld [vmem:[#allocation3] sm:$0xee]  ;;  %v1239_v54 = vcombine.high %v663_v49, %v664_v50  ;;  %v1238_v55 = vcombine.low %v663_v49, %v664_v50  ;;  %v736_v57 = vshll.u32 %v1241_v48, 16  ;;  %v724_v59 = vshll.u32 %v1240_v51, 16 }
 0x274   : > { %v1263_v20 = vcombine.high %v938_v52, %v664_v50  ;;  %v967_v7 = vrot.slane %v1241_v48, 1  ;;  %v1262_v17 = vcombine.low %v938_v52, %v664_v50  ;;  %v964_v21 = vrot.slane %v1240_v51, 1 }
 0x275   : > { %1261 = vmatprep.mubr.msk.bf16.mxu0 %vm795_vm2, %v1239_v54  ;;  %v731_v56 = vshll.u32 %v1239_v54, 16  ;;  %v719_v58 = vshll.u32 %v1238_v55, 16  ;;  %v729_v60 = vshrl.u32 %v1239_v54, 16  ;;  %v717_v62 = vshrl.u32 %v1238_v55, 16 }
 0x276   : > { %930 = vmatmul.mubr.bf16.vlgmr.msra.gmra.mrb[8].mxu0 %v1238_v55  ;;  %v738_v1 = vrot.slane %v736_v57, 1  ;;  %v966_v2 = vrot.slane %v1263_v20, 1  ;;  %v726_v4 = vrot.slane %v724_v59, 1  ;;  %v963_v19 = vrot.slane %v1262_v17, 1 }
 0x277   : > { %v733_v61 = vrot.slane %v731_v56, 1  ;;  %v721_v63 = vrot.slane %v719_v58, 1 }
 0x278   : > { %v968_v9 = vsel %vm520_vm11, %v966_v2, %v967_v7  ;;  %v965_v22 = vsel %vm520_vm11, %v963_v19, %v964_v21 }
 0x279   : > { %v734_v0 = vor.u32 %v733_v61, %v729_v60  ;;  %v722_v3 = vor.u32 %v721_v63, %v717_v62 }
 0x27b   : > { %v739_v6 = vsel %vm344_vm10, %v734_v0, %v738_v1  ;;  %v727_v8 = vsel %vm344_vm10, %v722_v3, %v726_v4 }
 0x27c   : > { %1251 = vmatprep.mubr.msk.bf16.mxu1 %vm795_vm2, %v739_v6 }
 0x27d   : > { %832 = vmatmul.mubr.bf16.vlgmr.msra.gmra.mrb[4].mxu1 %v727_v8 }
 0x27e   : > { %1028 = vmatpush1.bf16.msra.mxu1 %v1468_v5  ;;  %1273 = vmatprep.mubr.msk.bf16.mxu1 %vm795_vm2, %v968_v9 }
 0x27f   : > { %1029 = vmatprep.subr.bf16.mxu1 %v1647_v53 }
 0x282   : > { %1030 = vmatpush1.bf16.msra.mxu1 %v1470_v10 }
 0x283   : > { %1031 = vmatprep.subr.bf16.mxu1 %v1647_v53 }
 0x286   : > { %1032 = vmatpush1.bf16.msra.mxu1 %v1471_v11 }
 0x287   : > { %1033 = vmatprep.subr.bf16.mxu1 %v1647_v53 }
 0x28a   : > { %1034 = vmatpush1.bf16.msra.mxu1 %v1472_v12 }
 0x28b   : > { %1035 = vmatprep.subr.bf16.mxu1 %v1647_v53 }
 0x28e   : > { %1036 = vmatpush1.bf16.msra.mxu1 %v1473_v13 }
 0x28f   : > { %1037 = vmatprep.subr.bf16.mxu1 %v1647_v53 }
 0x292   : > { %1038 = vmatpush1.bf16.msra.mxu1 %v1474_v14 }
 0x293   : > { %1039 = vmatprep.subr.bf16.mxu1 %v1647_v53 }
 0x296   : > { %1040 = vmatpush1.bf16.msra.mxu1 %v1475_v15 }
 0x297   : > { %1041 = vmatprep.subr.bf16.mxu1 %v1647_v53 }
 0x29a   : > { %1042 = vmatpush1.bf16.msra.mxu1 %v1476_v16 }
 0x29b   : > { %1043 = vmatprep.subr.bf16.mxu1 %v1647_v53  ;;  %v1274_v53 = vld [vmem:[%s2010_s4] ss:$0 sm:$0xff] }
 0x29e   : > { %1044 = vmatpush1.bf16.msra.mxu1 %v1477_v18 }
 0x2a1   : > { %1060 = vmatmul.mubr.bf16.vlgmr.msra.gmra.mrb[8].mxu1 %v965_v22 }
 0x349   : > { %v931_v23 = vpop.f32.mrb[8].mxu0 }
 0x34a   : > { %v933_v24 = vpop.f32.mrb[9].mxu0 }
 0x34b   : > { %v934_v25 = vpop.f32.mrb[10].mxu0 }
 0x34c   : > { %v936_v26 = vpop.f32.mrb[11].mxu0 }
 0x350   : > { %v833_v27 = vpop.f32.mrb[4].mxu1 }
 0x351   : > { %v932_v28 = vadd.f32 %v931_v23, %v833_v27  ;;  %v835_v29 = vpop.f32.mrb[5].mxu1 }
 0x352   : > { %v836_v30 = vpop.f32.mrb[6].mxu1 }
 0x353   : > { %v935_v31 = vadd.f32 %v934_v25, %v836_v30  ;;  %v838_v32 = vpop.f32.mrb[7].mxu1 }
 0x374   : > { %v1061_v33 = vpop.f32.mrb[8].mxu1 }
 0x375   : > { %v1068_v34 = vadd.f32 %v1061_v33, %v932_v28  ;;  %v1063_v35 = vpop.f32.mrb[9].mxu1 }
 0x376   : > { %v1064_v36 = vpop.f32.mrb[10].mxu1 }
 0x377   : > { %v1077_v37 = vadd.f32 %v1274_v53, %v1068_v34  ;;  %v1069_v38 = vadd.f32 %v1064_v36, %v935_v31  ;;  %v1066_v39 = vpop.f32.mrb[11].mxu1 }
 0x379   : > { %v1078_v40 = vadd.f32 %v1274_v53, %v1069_v38  ;;  %v1079_v41 = vmax.f32 %v1077_v37, 0.0 }
 0x37b   : > { %v1080_v42 = vmax.f32 %v1078_v40, 0.0 }
 0x37d   : > { %v1289_v43 = vpack.c.bf16 %v1080_v42, %v1079_v41 }
 0x37f   : > { %1290 = vst [vmem:[%s271_s16] sm:$0xff] %v1289_v43  }
 0x380   : > { %1578 = shalt.err (!%p1575_p2)
}
 0x381   : > { %s1579_s10 = scalar_lea.hbm %s1959_s17, 128  ;;  %s1583_s30 = scalar_lea.hbm %s2011_s5, 256 }
 0x382   : > { %p1580_p13 = scmp.ne.s32.totalorder %s1959_s17, %s1579_s10  ;;  %p1584_p4 = scmp.lt.u32.totalorder %s1959_s17, %s2011_s5 }
 0x383   : > { %p1585_p5 = scmp.lt.u32.totalorder %s1583_s30, %s1579_s10  ;;  %p1587_p8 = scmp.lt.u32.totalorder %s1579_s10, %s1959_s17 }
 0x384   : > { %p1581_p6 = pnand %p1580_p13, %p2027_p0 }
 0x385   : > { %p1586_p11 = por %p1585_p5, %p1584_p4 }
 0x386   : > { %p1582_p10 = pneg %p1581_p6 }
 0x387   : > { %p1588_p1 = por %p1587_p8, %p1586_p11 }
 0x389   : > { %p1589_p3 = pnand %p1588_p1, %p1582_p10 }
 0x38b   : > { %1592 = shalt.err (!%p1589_p3)
}
 0x38c   : > { %s1650_s12 = smov 64  }
 0x38d   : > { %1361 = dma.vmem_to_hbm [thread:$0]  (%p2027_p0), %s1961_s9, 128, %s1959_s17, %s1092_s7, %s1650_s12, %s1650_s12, %s1645_s26  }
 0x38e PF: > { %s1120_s13 = sand.u32 1, %s1623_s18   ;;  %p2028_p7 = scmp.ne.s32.totalorder %s2016_s25, 0 }
 0x38f   : > { %p2029_p9 = scmp.ge.s32.totalorder %s1635_s21, 2  ;;  %s1121_s6 = scalar_lea.sflag [#allocation6], %s1120_s13 }
 0x391   : > { %p1375_p12 = pnand %p2029_p9, %p2028_p7 }
 0x393   : > { %1618 = dma.done.wait (!%p1375_p12), %s1121_s6, 128  }
 0x394   : > { %1620 = vsyncadd (!%p1375_p12), %s1121_s6, 4294967168  ;;  %p19_p2 = scmp.ge.s32.totalorder %s1791_s14, 4   ;;  %s2030_s18 = smov %s1627_s19 }
 0x395   : > { %s2031_s19 = smov %s1631_s20  ;;  %s2032_s20 = smov %s1807_s27 }
 0x396   : > { %s2033_s21 = smov %s1791_s14  ;;  %21 = sbr.rel (!%p19_p2) target bundleno = 6 (0x6), region = 97 }
 0x39d   :  { %1126 = vsyncpa [#allocation5], 1 }
 0x39e   :  { %1128 = vsyncpa [#allocation5 + $0x1], 1 }
 0x39f   :  { %1129 = vsyncpa [#allocation8], 1 }
 0x3a0   :  { %1130 = vsyncpa [#allocation6], 1 }
 0x3a1   :  { %1132 = vsyncpa [#allocation6 + $0x1], 1 }

</bundles_post_ra>
